<compile_context>
chip_gen: v6e
topology: v6e:2x2x1
jax: 0.10.0
libtpu: 0.0.40
codegen_flags: <defaults>
</compile_context>

<pallas_src>
import functools

import jax
import jax.numpy as jnp
from jax.experimental import pallas as pl
from jax.experimental.pallas import tpu as pltpu


def _make_mlp_kernel(num_layers):
    """Build a fused N-layer MLP kernel; all matmuls chained inside VMEM."""

    def kernel(x_ref, *refs):
        o_ref = refs[-1]
        # activation(x) and dropout(x) are identities for the default config.
        h = x_ref[...].astype(jnp.float32)                      # (tm, in)
        for l in range(num_layers):
            w = refs[2 * l][...]                                # (d_in, d_out)
            b = refs[2 * l + 1][...]                            # (1, d_out)
            h = jnp.dot(h, w, preferred_element_type=jnp.float32) + b
        o_ref[...] = h.astype(o_ref.dtype)

    return kernel


def _round_up(x, m):
    return ((x + m - 1) // m) * m


@functools.partial(jax.jit, static_argnames=("block_m",))
def mlp_forward(x, weights, biases, *, block_m=128):
    """x: (B, in_feat).  weights[i]: (d_in, d_out) (already transposed from
    torch's (out, in)); biases[i]: (1, d_out)."""
    B, in_feat = x.shape
    num_layers = len(weights)
    d_out = weights[-1].shape[1]

    # --- lane-dense output: pad final out-features to a multiple of 128 ----
    weights = list(weights)
    biases = list(biases)
    d_out_p = _round_up(d_out, 128)
    if d_out_p != d_out:
        weights[-1] = jnp.pad(weights[-1], ((0, 0), (0, d_out_p - d_out)))
        biases[-1] = jnp.pad(biases[-1], ((0, 0), (0, d_out_p - d_out)))

    # --- batch tiling -------------------------------------------------------
    if B > block_m:
        tm = block_m
        b_pad = _round_up(B, tm)
        if b_pad != B:
            x = jnp.pad(x, ((0, b_pad - B), (0, 0)))
    else:
        tm = B          # single tile == full array dims, no (8,128) issue
        b_pad = B
    grid = (b_pad // tm,)

    row_map = lambda i: (i, 0)
    const_map = lambda i: (0, 0)

    in_specs = [pl.BlockSpec((tm, in_feat), row_map)]
    operands = [x]
    for w, b in zip(weights, biases):
        in_specs.append(pl.BlockSpec(w.shape, const_map))   # weight, resident
        in_specs.append(pl.BlockSpec(b.shape, const_map))   # bias,   resident
        operands.extend((w, b))

    out = pl.pallas_call(
        _make_mlp_kernel(num_layers),
        out_shape=jax.ShapeDtypeStruct((b_pad, d_out_p), x.dtype),
        grid=grid,
        in_specs=in_specs,
        out_specs=pl.BlockSpec((tm, d_out_p), row_map),
        compiler_params=pltpu.CompilerParams(
            dimension_semantics=("parallel",)),
    )(*operands)
    return out[:B, :d_out]


# ---------------- pure-JAX reference (matches PyTorch MLP.forward) ----------
def mlp_ref(x, torch_weights, torch_biases):
    for w, b in zip(torch_weights, torch_biases):
        # activation = identity, dropout = identity (module defaults)
        x = x @ w.T + b[None, :]
    return x


def _to_kernel_layout(torch_weights, torch_biases):
    weights = [jnp.transpose(w) for w in torch_weights]          # (in, out)
    biases = [b.reshape(1, -1) for b in torch_biases]            # (1, out)
    return weights, biases


if __name__ == "__main__":
    # MLP(in_feat=128, out_feat=64, hid_feat=(256, 128)) at a small batch.
    B, IN, H1, H2, OUT = 8, 128, 256, 128, 64

    ks = jax.random.split(jax.random.PRNGKey(0), 8)
    # torch nn.Linear layout: weight (out, in), bias (out,)
    w1_t = 0.05 * jax.random.normal(ks[0], (H1, IN), jnp.float32)
    b1_t = 0.05 * jax.random.normal(ks[1], (H1,), jnp.float32)
    w2_t = 0.05 * jax.random.normal(ks[2], (H2, H1), jnp.float32)
    b2_t = 0.05 * jax.random.normal(ks[3], (H2,), jnp.float32)
    w3_t = 0.05 * jax.random.normal(ks[4], (OUT, H2), jnp.float32)
    b3_t = 0.05 * jax.random.normal(ks[5], (OUT,), jnp.float32)

    torch_ws = [w1_t, w2_t, w3_t]
    torch_bs = [b1_t, b2_t, b3_t]
    kernel_ws, kernel_bs = _to_kernel_layout(torch_ws, torch_bs)

    # --- small-batch path (single tile) -------------------------------------
    x_small = jax.random.normal(ks[6], (B, IN), jnp.float32)
    out_small = jax.block_until_ready(mlp_forward(x_small, kernel_ws, kernel_bs))
    ref_small = mlp_ref(x_small, torch_ws, torch_bs)
    assert out_small.shape == (B, OUT)
    err_s = float(jnp.max(jnp.abs(out_small - ref_small)))
    assert jnp.allclose(out_small, ref_small, atol=1e-4, rtol=1e-4), \
        f"small-batch max abs err {err_s}"

    # --- ragged larger batch (exercises grid tiling + batch padding) --------
    B2 = 260
    x_big = jax.random.normal(ks[7], (B2, IN), jnp.float32)
    out_big = jax.block_until_ready(mlp_forward(x_big, kernel_ws, kernel_bs))
    ref_big = mlp_ref(x_big, torch_ws, torch_bs)
    assert out_big.shape == (B2, OUT)
    err_b = float(jnp.max(jnp.abs(out_big - ref_big)))
    assert jnp.allclose(out_big, ref_big, atol=1e-4, rtol=1e-4), \
        f"big-batch max abs err {err_b}"

    print("KERNEL_OK")
</pallas_src>

<mosaic_0001>
module attributes {stable_mosaic.version = 11 : i64} {
  func.func @kernel(%arg0: i32, %arg1: memref<8x128xf32, #tpu.memory_space<vmem>>, %arg2: memref<128x256xf32, #tpu.memory_space<vmem>>, %arg3: memref<1x256xf32, #tpu.memory_space<vmem>>, %arg4: memref<256x128xf32, #tpu.memory_space<vmem>>, %arg5: memref<1x128xf32, #tpu.memory_space<vmem>>, %arg6: memref<128x128xf32, #tpu.memory_space<vmem>>, %arg7: memref<1x128xf32, #tpu.memory_space<vmem>>, %arg8: memref<8x128xf32, #tpu.memory_space<vmem>>) attributes {dimension_semantics = [#tpu.dimension_semantics<parallel>], iteration_bounds = array<i64: 1>, scalar_prefetch = 0 : i64, scratch_operands = 0 : i64, tpu.core_type = #tpu.core_type<tc>, window_params = [{transform_indices = @transform_0, window_bounds = array<i64: 8, 128>}, {pipeline_mode = #tpu.pipeline_mode<synchronous>, transform_indices = @transform_1, window_bounds = array<i64: 128, 256>}, {pipeline_mode = #tpu.pipeline_mode<synchronous>, transform_indices = @transform_2, window_bounds = array<i64: 1, 256>}, {pipeline_mode = #tpu.pipeline_mode<synchronous>, transform_indices = @transform_3, window_bounds = array<i64: 256, 128>}, {pipeline_mode = #tpu.pipeline_mode<synchronous>, transform_indices = @transform_4, window_bounds = array<i64: 1, 128>}, {pipeline_mode = #tpu.pipeline_mode<synchronous>, transform_indices = @transform_5, window_bounds = array<i64: 128, 128>}, {pipeline_mode = #tpu.pipeline_mode<synchronous>, transform_indices = @transform_6, window_bounds = array<i64: 1, 128>}, {transform_indices = @transform_7, window_bounds = array<i64: 8, 128>}]} {
    %c0 = arith.constant 0 : index
    %c0_0 = arith.constant 0 : index
    %0 = vector.load %arg1[%c0, %c0_0] : memref<8x128xf32, #tpu.memory_space<vmem>>, vector<8x128xf32>
    %c0_1 = arith.constant 0 : index
    %c0_2 = arith.constant 0 : index
    %1 = vector.load %arg2[%c0_1, %c0_2] : memref<128x256xf32, #tpu.memory_space<vmem>>, vector<128x256xf32>
    %c0_3 = arith.constant 0 : index
    %c0_4 = arith.constant 0 : index
    %2 = vector.load %arg3[%c0_3, %c0_4] : memref<1x256xf32, #tpu.memory_space<vmem>>, vector<1x256xf32>
    %cst = arith.constant dense<0.000000e+00> : vector<8x256xf32>
    %3 = tpu.matmul %0, %1, %cst {dimension_numbers = #tpu.dot_dimension_numbers<[1], [0], [0], [1], [0, 0, 1, 1], [], []>} : vector<8x128xf32>, vector<128x256xf32>, vector<8x256xf32> -> vector<8x256xf32>
    %4 = vector.broadcast %2 : vector<1x256xf32> to vector<8x256xf32>
    %5 = arith.addf %3, %4 : vector<8x256xf32>
    %c0_5 = arith.constant 0 : index
    %c0_6 = arith.constant 0 : index
    %6 = vector.load %arg4[%c0_5, %c0_6] : memref<256x128xf32, #tpu.memory_space<vmem>>, vector<256x128xf32>
    %c0_7 = arith.constant 0 : index
    %c0_8 = arith.constant 0 : index
    %7 = vector.load %arg5[%c0_7, %c0_8] : memref<1x128xf32, #tpu.memory_space<vmem>>, vector<1x128xf32>
    %cst_9 = arith.constant dense<0.000000e+00> : vector<8x128xf32>
    %8 = tpu.matmul %5, %6, %cst_9 {dimension_numbers = #tpu.dot_dimension_numbers<[1], [0], [0], [1], [0, 0, 1, 1], [], []>} : vector<8x256xf32>, vector<256x128xf32>, vector<8x128xf32> -> vector<8x128xf32>
    %9 = vector.broadcast %7 : vector<1x128xf32> to vector<8x128xf32>
    %10 = arith.addf %8, %9 : vector<8x128xf32>
    %c0_10 = arith.constant 0 : index
    %c0_11 = arith.constant 0 : index
    %11 = vector.load %arg6[%c0_10, %c0_11] : memref<128x128xf32, #tpu.memory_space<vmem>>, vector<128x128xf32>
    %c0_12 = arith.constant 0 : index
    %c0_13 = arith.constant 0 : index
    %12 = vector.load %arg7[%c0_12, %c0_13] : memref<1x128xf32, #tpu.memory_space<vmem>>, vector<1x128xf32>
    %cst_14 = arith.constant dense<0.000000e+00> : vector<8x128xf32>
    %13 = tpu.matmul %10, %11, %cst_14 {dimension_numbers = #tpu.dot_dimension_numbers<[1], [0], [0], [1], [0, 0, 1, 1], [], []>} : vector<8x128xf32>, vector<128x128xf32>, vector<8x128xf32> -> vector<8x128xf32>
    %14 = vector.broadcast %12 : vector<1x128xf32> to vector<8x128xf32>
    %15 = arith.addf %13, %14 : vector<8x128xf32>
    %c0_15 = arith.constant 0 : index
    %c0_16 = arith.constant 0 : index
    %16 = vector.load %arg8[%c0_15, %c0_16] : memref<8x128xf32, #tpu.memory_space<vmem>>, vector<8x128xf32>
    tpu.vector_store %arg8[%c0_15, %c0_16], %15 {strides = array<i32>} : memref<8x128xf32, #tpu.memory_space<vmem>>, vector<8x128xf32>,
    return
  }
  func.func @transform_0(%arg0: i32) -> (i32, i32) {
    %c0_i32 = arith.constant 0 : i32
    %c0_i32_0 = arith.constant 0 : i32
    return %arg0, %c0_i32 : i32, i32
  }
  func.func @transform_1(%arg0: i32) -> (i32, i32) {
    %c0_i32 = arith.constant 0 : i32
    %c0_i32_0 = arith.constant 0 : i32
    %c0_i32_1 = arith.constant 0 : i32
    return %c0_i32, %c0_i32_0 : i32, i32
  }
  func.func @transform_2(%arg0: i32) -> (i32, i32) {
    %c0_i32 = arith.constant 0 : i32
    %c0_i32_0 = arith.constant 0 : i32
    %c0_i32_1 = arith.constant 0 : i32
    return %c0_i32, %c0_i32_0 : i32, i32
  }
  func.func @transform_3(%arg0: i32) -> (i32, i32) {
    %c0_i32 = arith.constant 0 : i32
    %c0_i32_0 = arith.constant 0 : i32
    %c0_i32_1 = arith.constant 0 : i32
    return %c0_i32, %c0_i32_0 : i32, i32
  }
  func.func @transform_4(%arg0: i32) -> (i32, i32) {
    %c0_i32 = arith.constant 0 : i32
    %c0_i32_0 = arith.constant 0 : i32
    %c0_i32_1 = arith.constant 0 : i32
    return %c0_i32, %c0_i32_0 : i32, i32
  }
  func.func @transform_5(%arg0: i32) -> (i32, i32) {
    %c0_i32 = arith.constant 0 : i32
    %c0_i32_0 = arith.constant 0 : i32
    %c0_i32_1 = arith.constant 0 : i32
    return %c0_i32, %c0_i32_0 : i32, i32
  }
  func.func @transform_6(%arg0: i32) -> (i32, i32) {
    %c0_i32 = arith.constant 0 : i32
    %c0_i32_0 = arith.constant 0 : i32
    %c0_i32_1 = arith.constant 0 : i32
    return %c0_i32, %c0_i32_0 : i32, i32
  }
  func.func @transform_7(%arg0: i32) -> (i32, i32) {
    %c0_i32 = arith.constant 0 : i32
    %c0_i32_0 = arith.constant 0 : i32
    return %arg0, %c0_i32 : i32, i32
  }
}

</mosaic_0001>

<bundles_post_ra>
// kernel: mlp_forward.1
= control target key start
LH: loop header
LB: loop body
LE: loop exit
PB: predicated region body
PF: predicated region fallthrough
CT: control target
= control target key end

     0   :  { %12 = vsyncpa [#allocation3], 0  ;;  %s740_s0 = inlined_call_operand.vmem [shape: f32[8,128], index: 0, kind: input, shape index: {}]   ;;  %s741_s1 = inlined_call_operand.vmem [shape: f32[128,256], index: 1, kind: input, shape index: {}]   ;;  %s742_s2 = inlined_call_operand.vmem [shape: f32[1,256], index: 2, kind: input, shape index: {}]   ;;  %s743_s3 = inlined_call_operand.hbm [shape: f32[256,128], index: 3, kind: input, shape index: {}]   ;;  %s744_s4 = inlined_call_operand.vmem [shape: f32[1,128], index: 4, kind: input, shape index: {}]   ;;  %s745_s5 = inlined_call_operand.vmem [shape: f32[128,128], index: 5, kind: input, shape index: {}]   ;;  %s746_s6 = inlined_call_operand.vmem [shape: f32[1,128], index: 6, kind: input, shape index: {}]   ;;  %s747_s7 = inlined_call_operand.hbm [shape: f32[8,128], index: 7, kind: output, shape index: {}]  }
   0x1   :  { %13 = vsyncpa [#allocation4], 0  ;;  %s514_s24 = smov [#allocation2]  }
   0x2   :  { %s25_s25 = sshll.u32 %s514_s24, 4  ;;  %s26_s25 = int_to_ptr.vmem [resolvable:$true] %s25_s25 }
   0x3   :  { %s478_s26 = scalar_lea.vmem %s26_s25, 4096  ;;  %p483_p1 = scmp.lt.s32.totalorder %s26_s25, %s26_s25 }
   0x4   :  { %p479_p0 = scmp.ne.s32.totalorder %s26_s25, %s478_s26  ;;  %p484_p2 = scmp.lt.s32.totalorder %s478_s26, %s478_s26 }
   0x6   :  { %p485_p3 = por %p484_p2, %p483_p1 }
   0x8   :  { %p486_p4 = pnand %p485_p3, %p479_p0 }
   0xa   :  { %489 = shalt.err (!%p486_p4)
}
   0xb   :  { %s515_s27 = smov 128   ;;  %s516_s28 = smov 8  }
   0xc   :  { %31 = dma.hbm_to_vmem [thread:$0]  %s743_s3, 4096, %s26_s25, [#allocation3], %s515_s27, %s515_s27, %s516_s28  }
   0xd   :  { %510 = dma.done.wait [#allocation3], 4096  }
   0xe   :  { %511 = vsyncadd [#allocation3], 4294963200  ;;  %v517_v0 = vmov 0.0   ;;  %v73_v1 = vld [vmem:[%s741_s1 + $0xf8] sm:$0xff]  ;;  %v72_v2 = vld [vmem:[%s741_s1 + $0xf0] sm:$0xff]  ;;  %vm518_vm0 = vmmov 0  }
   0xf   :  { %150 = vmatprep.mubr.f32.mxu0 %v517_v0  ;;  %v71_v3 = vld [vmem:[%s741_s1 + $0xe8] sm:$0xff]  ;;  %86 = vmatprep.subr.mxu0 %v73_v1  ;;  %v70_v4 = vld [vmem:[%s741_s1 + $0xe0] sm:$0xff]  ;;  %v69_v5 = vld [vmem:[%s741_s1 + $0xd8] sm:$0xff]  ;;  %s519_s11 = smov [#allocation5]  }
  0x10   :  { %87 = vmatpush1.msra.mxu0 %v72_v2  ;;  %v68_v6 = vld [vmem:[%s741_s1 + $0xd0] sm:$0xff]  ;;  %v67_v7 = vld [vmem:[%s741_s1 + $0xc8] sm:$0xff]  ;;  %v66_v8 = vld [vmem:[%s741_s1 + $0xc0] sm:$0xff]  ;;  %s366_s12 = sshll.u32 %s519_s11, 4  ;;  %s367_s12 = int_to_ptr.vmem [resolvable:$true] %s366_s12 }
  0x11   :  { %88 = vmatprep.subr.mxu0 %v71_v3  ;;  %v65_v9 = vld [vmem:[%s741_s1 + $0xb8] sm:$0xff]  ;;  %v64_v10 = vld [vmem:[%s741_s1 + $0xb0] sm:$0xff]  ;;  %v63_v11 = vld [vmem:[%s741_s1 + $0xa8] sm:$0xff]  ;;  %p495_p6 = scmp.lt.s32.totalorder %s367_s12, %s367_s12 }
  0x12   :  { %89 = vmatpush1.msra.mxu0 %v70_v4  ;;  %v62_v12 = vld [vmem:[%s741_s1 + $0xa0] sm:$0xff]  ;;  %v61_v13 = vld [vmem:[%s741_s1 + $0x98] sm:$0xff]  ;;  %v60_v14 = vld [vmem:[%s741_s1 + $0x90] sm:$0xff] }
  0x13   :  { %90 = vmatprep.subr.mxu0 %v69_v5  ;;  %v188_v15 = vld [vmem:[#allocation2 + $0xf8] sm:$0xff]  ;;  %v187_v17 = vld [vmem:[#allocation2 + $0xf0] sm:$0xff]  ;;  %v59_v18 = vld [vmem:[%s741_s1 + $0x88] sm:$0xff] }
  0x14   :  { %91 = vmatpush1.msra.mxu0 %v68_v6  ;;  %v172_v16 = vld [vmem:[#allocation2 + $0x78] sm:$0xff]  ;;  %377 = vmatprep.subr.mxu1 %v188_v15  ;;  %v171_v19 = vld [vmem:[#allocation2 + $0x70] sm:$0xff]  ;;  %v58_v20 = vld [vmem:[%s741_s1 + $0x80] sm:$0xff]  ;;  %v76_v15 = vlaneseq }
  0x15   :  { %92 = vmatprep.subr.mxu0 %v67_v7  ;;  %378 = vmatpush3.msra.mxu1 %v172_v16  ;;  %v186_v21 = vld [vmem:[#allocation2 + $0xe8] sm:$0xff]  ;;  %v57_v22 = vld [vmem:[%s741_s1 + $0x78] sm:$0xff]  ;;  %v56_v24 = vld [vmem:[%s741_s1 + $0x70] sm:$0xff] }
  0x16   :  { %93 = vmatpush1.msra.mxu0 %v66_v8  ;;  %379 = vmatprep.subr.mxu1 %v187_v17  ;;  %v170_v23 = vld [vmem:[#allocation2 + $0x68] sm:$0xff]  ;;  %v185_v25 = vld [vmem:[#allocation2 + $0xe0] sm:$0xff]  ;;  %v184_v29 = vld [vmem:[#allocation2 + $0xd8] sm:$0xff]  ;;  %v77_v16 = vshrl.u32 %v76_v15, 7 }
  0x17   :  { %94 = vmatprep.subr.mxu0 %v65_v9  ;;  %380 = vmatpush3.msra.mxu1 %v171_v19  ;;  %v55_v26 = vld [vmem:[%s741_s1 + $0x68] sm:$0xff]  ;;  %v169_v27 = vld [vmem:[#allocation2 + $0x60] sm:$0xff]  ;;  %v53_v30 = vld [vmem:[%s741_s1 + $0x58] sm:$0xff] }
  0x18   :  { %95 = vmatpush1.msra.mxu0 %v64_v10  ;;  %381 = vmatprep.subr.mxu1 %v186_v21  ;;  %v54_v28 = vld [vmem:[%s741_s1 + $0x60] sm:$0xff]  ;;  %v168_v31 = vld [vmem:[#allocation2 + $0x58] sm:$0xff]  ;;  %v52_v32 = vld [vmem:[%s741_s1 + $0x50] sm:$0xff]  ;;  %v82_v17 = vsub.s32 1, %v77_v16 }
  0x19   :  { %96 = vmatprep.subr.mxu0 %v63_v11  ;;  %382 = vmatpush3.msra.mxu1 %v170_v23  ;;  %v183_v33 = vld [vmem:[#allocation2 + $0xd0] sm:$0xff]  ;;  %v51_v34 = vld [vmem:[%s741_s1 + $0x48] sm:$0xff]  ;;  %v50_v36 = vld [vmem:[%s741_s1 + $0x40] sm:$0xff] }
  0x1a   :  { %97 = vmatpush1.msra.mxu0 %v62_v12  ;;  %383 = vmatprep.subr.mxu1 %v185_v25  ;;  %v167_v35 = vld [vmem:[#allocation2 + $0x50] sm:$0xff]  ;;  %v182_v37 = vld [vmem:[#allocation2 + $0xc8] sm:$0xff]  ;;  %v49_v38 = vld [vmem:[%s741_s1 + $0x38] sm:$0xff] }
  0x1b   :  { %98 = vmatprep.subr.mxu0 %v61_v13  ;;  %384 = vmatpush3.msra.mxu1 %v169_v27  ;;  %v166_v39 = vld [vmem:[#allocation2 + $0x48] sm:$0xff]  ;;  %v48_v40 = vld [vmem:[%s741_s1 + $0x30] sm:$0xff]  ;;  %v181_v41 = vld [vmem:[#allocation2 + $0xc0] sm:$0xff] }
  0x1c   :  { %99 = vmatpush1.msra.mxu0 %v60_v14  ;;  %385 = vmatprep.subr.mxu1 %v184_v29  ;;  %v47_v42 = vld [vmem:[%s741_s1 + $0x28] sm:$0xff]  ;;  %v165_v43 = vld [vmem:[#allocation2 + $0x40] sm:$0xff]  ;;  %v180_v45 = vld [vmem:[#allocation2 + $0xb8] sm:$0xff] }
  0x1d   :  { %100 = vmatprep.subr.mxu0 %v59_v18  ;;  %386 = vmatpush3.msra.mxu1 %v168_v31  ;;  %v46_v44 = vld [vmem:[%s741_s1 + $0x20] sm:$0xff]  ;;  %v45_v46 = vld [vmem:[%s741_s1 + $0x18] sm:$0xff]  ;;  %v44_v48 = vld [vmem:[%s741_s1 + $0x10] sm:$0xff]  ;;  %v78_v18 = vsub.s32 0, %v77_v16 }
  0x1e   :  { %101 = vmatpush1.msra.mxu0 %v58_v20  ;;  %387 = vmatprep.subr.mxu1 %v183_v33  ;;  %v164_v47 = vld [vmem:[#allocation2 + $0x38] sm:$0xff]  ;;  %v179_v49 = vld [vmem:[#allocation2 + $0xb0] sm:$0xff]  ;;  %v43_v50 = vld [vmem:[%s741_s1 + $0x8] sm:$0xff] }
  0x1f   :  { %102 = vmatprep.subr.mxu0 %v57_v22  ;;  %388 = vmatpush3.msra.mxu1 %v167_v35  ;;  %v163_v51 = vld [vmem:[#allocation2 + $0x30] sm:$0xff]  ;;  %v42_v52 = vld [vmem:[%s741_s1] sm:$0xff]  ;;  %v178_v53 = vld [vmem:[#allocation2 + $0xa8] sm:$0xff] }
  0x20   :  { %103 = vmatpush1.msra.mxu0 %v56_v24  ;;  %389 = vmatprep.subr.mxu1 %v182_v37  ;;  %v41_v54 = vld [vmem:[%s740_s0] sm:$0xff]  ;;  %v162_v55 = vld [vmem:[#allocation2 + $0x28] sm:$0xff]  ;;  %v176_v58 = vld [vmem:[#allocation2 + $0x98] sm:$0xff] }
  0x21   :  { %104 = vmatprep.subr.mxu0 %v55_v26  ;;  %390 = vmatpush3.msra.mxu1 %v166_v39  ;;  %v177_v56 = vld [vmem:[#allocation2 + $0xa0] sm:$0xff]  ;;  %v160_v59 = vld [vmem:[#allocation2 + $0x18] sm:$0xff]  ;;  %v175_v60 = vld [vmem:[#allocation2 + $0x90] sm:$0xff] }
  0x22   :  { %105 = vmatpush1.msra.mxu0 %v54_v28  ;;  %391 = vmatprep.subr.mxu1 %v181_v41  ;;  %v161_v57 = vld [vmem:[#allocation2 + $0x20] sm:$0xff]  ;;  %v159_v61 = vld [vmem:[#allocation2 + $0x10] sm:$0xff]  ;;  %v174_v62 = vld [vmem:[#allocation2 + $0x88] sm:$0xff] }
  0x23   :  { %106 = vmatprep.subr.mxu0 %v53_v30  ;;  %392 = vmatpush3.msra.mxu1 %v165_v43  ;;  %v158_v63 = vld [vmem:[#allocation2 + $0x8] sm:$0xff]  ;;  %v173_v1 = vld [vmem:[#allocation2 + $0x80] sm:$0xff]  ;;  %v281_v3 = vld [vmem:[%s745_s5 + $0x78] sm:$0xff] }
  0x24   :  { %107 = vmatpush1.msra.mxu0 %v52_v32  ;;  %393 = vmatprep.subr.mxu1 %v180_v45  ;;  %v157_v2 = vld [vmem:[#allocation2] sm:$0xff]  ;;  %v280_v4 = vld [vmem:[%s745_s5 + $0x70] sm:$0xff]  ;;  %v279_v5 = vld [vmem:[%s745_s5 + $0x68] sm:$0xff] }
  0x25   :  { %108 = vmatprep.subr.mxu0 %v51_v34  ;;  %394 = vmatpush3.msra.mxu1 %v164_v47  ;;  %v278_v6 = vld [vmem:[%s745_s5 + $0x60] sm:$0xff]  ;;  %v277_v7 = vld [vmem:[%s745_s5 + $0x58] sm:$0xff]  ;;  %v276_v8 = vld [vmem:[%s745_s5 + $0x50] sm:$0xff] }
  0x26   :  { %109 = vmatpush1.msra.mxu0 %v50_v36  ;;  %395 = vmatprep.subr.mxu1 %v179_v49  ;;  %v275_v9 = vld [vmem:[%s745_s5 + $0x48] sm:$0xff]  ;;  %v274_v10 = vld [vmem:[%s745_s5 + $0x40] sm:$0xff]  ;;  %v273_v11 = vld [vmem:[%s745_s5 + $0x38] sm:$0xff] }
  0x27   :  { %110 = vmatprep.subr.mxu0 %v49_v38  ;;  %396 = vmatpush3.msra.mxu1 %v163_v51  ;;  %v272_v12 = vld [vmem:[%s745_s5 + $0x30] sm:$0xff]  ;;  %v271_v13 = vld [vmem:[%s745_s5 + $0x28] sm:$0xff]  ;;  %v270_v14 = vld [vmem:[%s745_s5 + $0x20] sm:$0xff] }
  0x28   :  { %111 = vmatpush1.msra.mxu0 %v48_v40  ;;  %397 = vmatprep.subr.mxu1 %v178_v53  ;;  %v74_v19 = vld [vmem:[%s742_s2] sm:$0x3]  ;;  %v269_v26 = vld [vmem:[%s745_s5 + $0x18] sm:$0xff]  ;;  %v268_v27 = vld [vmem:[%s745_s5 + $0x10] sm:$0xff] }
  0x29   :  { %112 = vmatprep.subr.mxu0 %v47_v42  ;;  %398 = vmatpush3.msra.mxu1 %v162_v55  ;;  %v83_v20 = vrot.slane %v74_v19, %v82_v17  ;;  %v79_v21 = vrot.slane %v74_v19, %v78_v18  ;;  %v267_v28 = vld [vmem:[%s745_s5 + $0x8] sm:$0xff]  ;;  %v266_v29 = vld [vmem:[%s745_s5] sm:$0xff]  ;;  %s490_s5 = scalar_lea.vmem %s367_s12, 128 }
  0x2a   :  { %113 = vmatpush1.msra.mxu0 %v46_v44  ;;  %399 = vmatprep.subr.mxu1 %v177_v56  ;;  %v375_v31 = vld [vmem:[%s744_s4] ss:$0 sm:$0xff]  ;;  %p491_p5 = scmp.ne.s32.totalorder %s367_s12, %s490_s5  ;;  %p496_p7 = scmp.lt.s32.totalorder %s490_s5, %s490_s5 }
  0x2b   :  { %114 = vmatprep.subr.mxu0 %v45_v46  ;;  %400 = vmatpush3.msra.mxu1 %v161_v57  ;;  %v376_v35 = vld [vmem:[%s746_s6] ss:$0 sm:$0xff] }
  0x2c   :  { %115 = vmatpush1.msra.mxu0 %v44_v48  ;;  %401 = vmatprep.subr.mxu1 %v176_v58  ;;  %p497_p8 = por %p496_p7, %p495_p6 }
  0x2d   :  { %116 = vmatprep.subr.mxu0 %v43_v50  ;;  %402 = vmatpush3.msra.mxu1 %v160_v59 }
  0x2e   :  { %117 = vmatpush1.msra.mxu0 %v42_v52  ;;  %403 = vmatprep.subr.mxu1 %v175_v60  ;;  %p498_p9 = pnand %p497_p8, %p491_p5 }
  0x2f   :  { %151 = vmatmul.mubr.f32.vlgmr.msra.gmra.mxu0 %v41_v54  ;;  %429 = vmatprep.subr.mxu0 %v517_v0 }
  0x30   :  { %404 = vmatpush3.msra.mxu1 %v159_v61  ;;  %430 = vmatpush3.msra.mxu0 %v281_v3 }
  0x31   :  { %405 = vmatprep.subr.mxu1 %v174_v62  ;;  %431 = vmatprep.subr.mxu0 %v517_v0 }
  0x32   :  { %406 = vmatpush3.msra.mxu1 %v158_v63  ;;  %432 = vmatpush3.msra.mxu0 %v280_v4 }
  0x33   :  { %407 = vmatprep.subr.mxu1 %v173_v1  ;;  %433 = vmatprep.subr.mxu0 %v517_v0 }
  0x34   :  { %408 = vmatpush3.msra.mxu1 %v157_v2  ;;  %434 = vmatpush3.msra.mxu0 %v279_v5 }
  0x35   :  { %435 = vmatprep.subr.mxu0 %v517_v0  ;;  %461 = vmatprep.mubr.msk.f32.mxu0 %vm518_vm0, %v517_v0 }
  0x36   :  { %436 = vmatpush3.msra.mxu0 %v278_v6 }
  0x37   :  { %437 = vmatprep.subr.mxu0 %v517_v0 }
  0x38   :  { %438 = vmatpush3.msra.mxu0 %v277_v7 }
  0x39   :  { %439 = vmatprep.subr.mxu0 %v517_v0 }
  0x3a   :  { %440 = vmatpush3.msra.mxu0 %v276_v8 }
  0x3b   :  { %441 = vmatprep.subr.mxu0 %v517_v0 }
  0x3c   :  { %442 = vmatpush3.msra.mxu0 %v275_v9 }
  0x3d   :  { %443 = vmatprep.subr.mxu0 %v517_v0 }
  0x3e   :  { %444 = vmatpush3.msra.mxu0 %v274_v10 }
  0x3f   :  { %445 = vmatprep.subr.mxu0 %v517_v0 }
  0x40   :  { %446 = vmatpush3.msra.mxu0 %v273_v11 }
  0x41   :  { %447 = vmatprep.subr.mxu0 %v517_v0 }
  0x42   :  { %448 = vmatpush3.msra.mxu0 %v272_v12 }
  0x43   :  { %449 = vmatprep.subr.mxu0 %v517_v0 }
  0x44   :  { %450 = vmatpush3.msra.mxu0 %v271_v13 }
  0x45   :  { %451 = vmatprep.subr.mxu0 %v517_v0 }
  0x46   :  { %452 = vmatpush3.msra.mxu0 %v270_v14 }
  0x47   :  { %453 = vmatprep.subr.mxu0 %v517_v0 }
  0x48   :  { %454 = vmatpush3.msra.mxu0 %v269_v26 }
  0x49   :  { %455 = vmatprep.subr.mxu0 %v517_v0 }
  0x4a   :  { %456 = vmatpush3.msra.mxu0 %v268_v27 }
  0x4b   :  { %457 = vmatprep.subr.mxu0 %v517_v0 }
  0x4c   :  { %458 = vmatpush3.msra.mxu0 %v267_v28 }
  0x4d   :  { %459 = vmatprep.subr.mxu0 %v517_v0 }
  0x4e   :  { %460 = vmatpush3.msra.mxu0 %v266_v29 }
  0xef   :  { %v152_v22 = vpop.f32.mrf.mxu0 }
  0xf0   :  { %v153_v25 = vadd.f32 %v152_v22, %v79_v21 }
  0xf1   :  { %v154_v23 = vpop.f32.mrf.mxu0 }
  0xf2   :  { %v155_v24 = vadd.f32 %v154_v23, %v83_v20 }
  0xf4   :  { %260 = vmatprep.mubr.f32.mxu1 %v155_v24 }
  0xf5   :  { %261 = vmatmul.mubr.f32.vlgmr.msra.gmra.mxu1 %v153_v25 }
 0x1b5   :  { %v409_v30 = vpop.f32.mrf.mxu1 }
 0x1b7   :  { %v410_v32 = vpop.f32.mrf.mxu1 }
 0x1b8   :  { %v411_v33 = vadd.f32 %v410_v32, %v409_v30 }
 0x1ba   :  { %v263_v34 = vadd.f32 %v411_v33, %v375_v31 }
 0x1bc   :  { %462 = vmatmul.mubr.f32.vlgmr.msra.gmra.mxu0 %v263_v34 }
 0x27c   :  { %v355_v36 = vpop.f32.mrf.mxu0 }
 0x27d   :  { %v356_v37 = vadd.f32 %v376_v35, %v355_v36 }
 0x27e   :  { %v463_v38 = vpop.f32.mrf.mxu0 }
 0x27f   :  { %359 = vst [vmem:[#allocation5] sm:$0xff] %v356_v37 }
 0x280   :  { %501 = shalt.err (!%p498_p9)
}
 0x281   :  { %369 = dma.vmem_to_hbm [thread:$0]  %s367_s12, 128, %s747_s7, [#allocation4]  }
 0x282   :  { %512 = dma.done.wait [#allocation4], 128  }
 0x283   :  { %513 = vsyncadd [#allocation4], 4294967168 }
 0x284   :  { %373 = vsyncpa [#allocation3], 1 }
 0x285   :  { %374 = vsyncpa [#allocation4], 1 }

</bundles_post_ra>
